<compile_context>
chip_gen: v6e
topology: v6e:2x2x1
jax: 0.10.0
libtpu: 0.0.40
codegen_flags: <defaults>
</compile_context>

<pallas_src>
import functools

import jax
import jax.numpy as jnp
import numpy as np
from jax.experimental import pallas as pl
from jax.experimental.pallas import tpu as pltpu


def _core_centroid_loss_kernel(E_ref, H_ref, labels_ref, out_ref, *,
                               lam1, lam2, lam3, eps, n_total):
    i = pl.program_id(0)
    k, h = E_ref.shape
    tn = H_ref.shape[0]

    @pl.when(i == 0)
    def _init():
        if lam3:
            E_nat = E_ref[...]
            ED = jnp.einsum('ih,jh->ij', E_nat, E_nat,
                            preferred_element_type=jnp.float32)          # (k, k)
            ridx = jax.lax.broadcasted_iota(jnp.int32, (k, k), 0)
            cidx = jax.lax.broadcasted_iota(jnp.int32, (k, k), 1)
            diag = jnp.where(ridx == cidx, ED, 0.0)                      # ||E_i||^2 on diag
            e_sq_col = jnp.sum(diag, axis=1, keepdims=True)              # (k, 1)
            e_sq_row = jnp.sum(diag, axis=0, keepdims=True)              # (1, k)
            EN = jnp.sqrt(e_sq_col) * jnp.sqrt(e_sq_row) + eps
            ES = ED / EN
            ET = (cidx > ridx).astype(jnp.float32)                       # strict upper tri
            num_pairs = k * (k - 1) / 2.0
            # sum(ET * 0.5*(1 - ES)) == 0.5 * (num_pairs - sum(ET * ES))
            s = jnp.sum(ET * ES, keepdims=True)                          # (1, 1)
            out_ref[...] = ((-(lam3 / num_pairs) * 0.5)
                            * (num_pairs - s)).astype(jnp.float32)
        else:
            out_ref[...] = jnp.zeros_like(out_ref)

    if lam1 or lam2:
        E_nat = E_ref[...]
        H_nat = H_ref[...]
        # (k, tile_n) similarity numerator: n on the lane axis, native dtype on MXU.
        D = jnp.einsum('kh,nh->kn', E_nat, H_nat,
                       preferred_element_type=jnp.float32)
        Ef = E_nat.astype(jnp.float32)
        enorm_col = jnp.sqrt(jnp.sum(Ef * Ef, axis=1, keepdims=True))    # (k, 1)
        Hf = H_nat.astype(jnp.float32)
        ones_row = jnp.ones((1, h), dtype=jnp.float32)
        h_sq_row = jnp.einsum('oh,nh->on', ones_row, Hf * Hf,
                              preferred_element_type=jnp.float32)        # (1, tn)
        hnorm_row = jnp.sqrt(h_sq_row)
        N = enorm_col * hnorm_row + eps                                  # (k, tn)
        S = D / N
        labels_row = labels_ref[...]                                     # (1, tn) int32
        kk = jax.lax.broadcasted_iota(jnp.int32, (k, tn), 0)
        on_val = jnp.float32(lam1 / n_total)
        off_val = jnp.float32(-lam2 / (n_total * (k - 1)))
        # padded columns carry label == -1 -> weight 0 (contribute nothing)
        T = jnp.where(kk == labels_row, on_val,
                      jnp.where(labels_row >= 0, off_val, jnp.float32(0.0)))
        # sum(T * 0.5*(1 - S)) == 0.5*(sum(T) - sum(T*S))
        tile_loss = 0.5 * (jnp.sum(T, keepdims=True)
                           - jnp.sum(T * S, keepdims=True))              # (1, 1)
        out_ref[...] += tile_loss.astype(jnp.float32)


def _pick_tile_n(h, itemsize):
    """Largest H-row tile (multiple of 128, <= 512) keeping the double-buffered
    H tile plus f32 temporaries comfortably inside scoped VMEM on v5e/v6e/v7x."""
    budget = 4 * 1024 * 1024                     # bytes per H input tile
    t = budget // max(1, h * itemsize)
    t = (int(t) // 128) * 128
    return max(128, min(512, t))


def core_centroid_loss(E, H, labels, lam1, lam2, lam3, epsilon=1e-7):
    """Pallas TPU implementation of CORECentroidLoss.forward (returns a scalar)."""
    k, h = E.shape
    n = H.shape[0]
    assert H.shape[1] == h
    if lam2 or lam3:
        assert k > 1, "lam2/lam3 terms are undefined for k == 1"

    tile_n = _pick_tile_n(h, jnp.dtype(H.dtype).itemsize)
    n_pad128 = ((n + 127) // 128) * 128
    tile_n = min(tile_n, n_pad128)
    num_tiles = int(pl.cdiv(n_pad128, tile_n))
    n_pad = num_tiles * tile_n

    H_p = H if n_pad == n else jnp.pad(H, ((0, n_pad - n), (0, 0)))
    labels_row = jnp.full((1, n_pad), -1, dtype=jnp.int32)
    labels_row = labels_row.at[0, :n].set(
        jnp.asarray(labels, dtype=jnp.int32).reshape(-1))

    kernel = functools.partial(
        _core_centroid_loss_kernel,
        lam1=float(lam1), lam2=float(lam2), lam3=float(lam3),
        eps=float(epsilon), n_total=int(n))

    out = pl.pallas_call(
        kernel,
        out_shape=jax.ShapeDtypeStruct((1, 1), jnp.float32),
        grid=(num_tiles,),
        in_specs=[
            pl.BlockSpec((k, h), lambda i: (0, 0)),        # E: resident
            pl.BlockSpec((tile_n, h), lambda i: (i, 0)),   # H: streamed n-tiles
            pl.BlockSpec((1, tile_n), lambda i: (0, i)),   # labels: lane-dense row
        ],
        out_specs=pl.BlockSpec((1, 1), lambda i: (0, 0)),  # resident scalar accumulator
        compiler_params=pltpu.CompilerParams(
            dimension_semantics=("arbitrary",),
            vmem_limit_bytes=32 * 1024 * 1024,
        ),
    )(E, H_p, labels_row)
    return out[0, 0]


def _reference_loss(E, H, labels, lam1, lam2, lam3, epsilon=1e-7):
    """Pure-JAX reference mirroring the PyTorch forward exactly."""
    E = E.astype(jnp.float32)
    H = H.astype(jnp.float32)
    k = E.shape[0]
    n = H.shape[0]
    enorm = jnp.linalg.norm(E, axis=1)
    loss = 0.0
    if lam1 or lam2:
        D = H @ E.T
        N = jnp.linalg.norm(H, axis=1)[:, None] * enorm[None, :] + epsilon
        S = D / N
        C = 0.5 * (1.0 - S)
        t = np.full((n, k), -lam2 / (n * (k - 1)), dtype=np.float32)
        t[np.arange(n), np.asarray(labels)] = lam1 / n
        loss = loss + jnp.sum(jnp.asarray(t) * C)
    if lam3:
        ED = E @ E.T
        EN = enorm[:, None] * enorm[None, :] + epsilon
        ES = ED / EN
        EC = 0.5 * (1.0 - ES)
        et = np.triu(np.ones((k, k), dtype=np.float32))
        np.fill_diagonal(et, 0.0)
        normalizer = lam3 / et.sum()
        loss = loss - normalizer * jnp.sum(jnp.asarray(et) * EC)
    return jnp.float32(loss)


if __name__ == "__main__":
    # Small shapes consistent with the module: E (k,h) centroids, H (n,h), labels (n,)
    # n=1000 exercises multi-tile accumulation + the padded last tile.
    k, n, h = 8, 1000, 128
    lam1, lam2, lam3 = 1.0, 0.5, 0.3

    key = jax.random.PRNGKey(0)
    kE, kH, kL = jax.random.split(key, 3)
    E = jax.random.normal(kE, (k, h), dtype=jnp.float32)
    H = jax.random.normal(kH, (n, h), dtype=jnp.float32)
    labels = jax.random.randint(kL, (n,), 0, k, dtype=jnp.int32)

    loss = core_centroid_loss(E, H, labels, lam1, lam2, lam3)
    loss = jax.block_until_ready(loss)

    ref = _reference_loss(E, H, labels, lam1, lam2, lam3)
    assert np.allclose(np.asarray(loss), np.asarray(ref), rtol=1e-4, atol=1e-5), \
        f"mismatch: pallas={loss} ref={ref}"

    print("KERNEL_OK")
</pallas_src>

<mosaic_0001>
module attributes {stable_mosaic.version = 11 : i64} {
  func.func @_core_centroid_loss_kernel(%arg0: i32, %arg1: memref<8x128xf32, #tpu.memory_space<vmem>>, %arg2: memref<512x128xf32, #tpu.memory_space<vmem>>, %arg3: memref<1x512xi32, #tpu.memory_space<vmem>>, %arg4: memref<1x1xf32, #tpu.memory_space<vmem>>) attributes {dimension_semantics = [#tpu.dimension_semantics<arbitrary>], iteration_bounds = array<i64: 2>, scalar_prefetch = 0 : i64, scratch_operands = 0 : i64, tpu.core_type = #tpu.core_type<tc>, window_params = [{pipeline_mode = #tpu.pipeline_mode<synchronous>, transform_indices = @transform_0, window_bounds = array<i64: 8, 128>}, {transform_indices = @transform_1, window_bounds = array<i64: 512, 128>}, {transform_indices = @transform_2, window_bounds = array<i64: 1, 512>}, {pipeline_mode = #tpu.pipeline_mode<synchronous>, transform_indices = @transform_3, window_bounds = array<i64: 1, 1>}]} {
    %c0_i32 = arith.constant 0 : i32
    %0 = arith.cmpi eq, %arg0, %c0_i32 : i32
    %1 = arith.extui %0 : i1 to i32
    %c0_i32_0 = arith.constant 0 : i32
    %2 = arith.cmpi ne, %1, %c0_i32_0 : i32
    scf.if %2 {
      %c0_21 = arith.constant 0 : index
      %c0_22 = arith.constant 0 : index
      %50 = vector.load %arg1[%c0_21, %c0_22] : memref<8x128xf32, #tpu.memory_space<vmem>>, vector<8x128xf32>
      "tpu.trace_start"() <{level = 10 : i32, message = "ih,jh->ij"}> : () -> ()
      %cst_23 = arith.constant dense<0.000000e+00> : vector<8x8xf32>
      %51 = tpu.matmul %50, %50, %cst_23 {dimension_numbers = #tpu.dot_dimension_numbers<[1], [1], [0], [0], [0, 0, 1, 0], [], []>} : vector<8x128xf32>, vector<8x128xf32>, vector<8x8xf32> -> vector<8x8xf32>
      "tpu.trace_stop"() : () -> ()
      %52 = tpu.iota {dimensions = array<i32: 0>} : vector<8x8xi32>
      %53 = tpu.iota {dimensions = array<i32: 1>} : vector<8x8xi32>
      %54 = arith.cmpi eq, %52, %53 : vector<8x8xi32>
      %cst_24 = arith.constant 0.000000e+00 : f32
      %55 = vector.broadcast %cst_24 : f32 to vector<8x8xf32>
      %56 = arith.select %54, %51, %55 : vector<8x8xi1>, vector<8x8xf32>
      %cst_25 = arith.constant dense<0.000000e+00> : vector<8xf32>
      %57 = vector.multi_reduction <add>, %56, %cst_25 [1] : vector<8x8xf32> to vector<8xf32>
      %58 = vector.shape_cast %57 : vector<8xf32> to vector<8x1xf32>
      %cst_26 = arith.constant dense<0.000000e+00> : vector<8xf32>
      %59 = vector.multi_reduction <add>, %56, %cst_26 [0] : vector<8x8xf32> to vector<8xf32>
      %60 = vector.shape_cast %59 : vector<8xf32> to vector<1x8xf32>
      %61 = math.sqrt %58 : vector<8x1xf32>
      %62 = math.sqrt %60 : vector<1x8xf32>
      %63 = vector.broadcast %61 : vector<8x1xf32> to vector<8x8xf32>
      %64 = vector.broadcast %62 : vector<1x8xf32> to vector<8x8xf32>
      %65 = arith.mulf %63, %64 : vector<8x8xf32>
      %cst_27 = arith.constant 1.000000e-07 : f32
      %66 = vector.broadcast %cst_27 : f32 to vector<8x8xf32>
      %67 = arith.addf %65, %66 : vector<8x8xf32>
      %68 = arith.divf %51, %67 : vector<8x8xf32>
      %69 = arith.cmpi sgt, %53, %52 : vector<8x8xi32>
      %70 = arith.extui %69 : vector<8x8xi1> to vector<8x8xi32>
      %71 = arith.sitofp %70 : vector<8x8xi32> to vector<8x8xf32>
      %72 = arith.mulf %71, %68 : vector<8x8xf32>
      %73 = vector.shape_cast %72 : vector<8x8xf32> to vector<1x8x8xf32>
      %cst_28 = arith.constant dense<0.000000e+00> : vector<1xf32>
      %74 = vector.multi_reduction <add>, %73, %cst_28 [1, 2] : vector<1x8x8xf32> to vector<1xf32>
      %75 = vector.shape_cast %74 : vector<1xf32> to vector<1x1x1xf32>
      %76 = vector.extract %75[0, 0, 0] : f32 from vector<1x1x1xf32>
      %77 = vector.broadcast %76 : f32 to vector<1x1xf32>
      %cst_29 = arith.constant 2.800000e+01 : f32
      %78 = vector.broadcast %cst_29 : f32 to vector<1x1xf32>
      %79 = arith.subf %78, %77 : vector<1x1xf32>
      %cst_30 = arith.constant -0.005357143 : f32
      %80 = vector.broadcast %cst_30 : f32 to vector<1x1xf32>
      %81 = arith.mulf %80, %79 : vector<1x1xf32>
      %c0_31 = arith.constant 0 : index
      %c0_32 = arith.constant 0 : index
      %82 = vector.load %arg4[%c0_31, %c0_32] : memref<1x1xf32, #tpu.memory_space<vmem>>, vector<1x1xf32>
      tpu.vector_store %arg4[%c0_31, %c0_32], %81 {strides = array<i32>} : memref<1x1xf32, #tpu.memory_space<vmem>>, vector<1x1xf32>,
    } else {
    }
    %c0 = arith.constant 0 : index
    %c0_1 = arith.constant 0 : index
    %3 = vector.load %arg1[%c0, %c0_1] : memref<8x128xf32, #tpu.memory_space<vmem>>, vector<8x128xf32>
    %c0_2 = arith.constant 0 : index
    %c0_3 = arith.constant 0 : index
    %4 = vector.load %arg2[%c0_2, %c0_3] : memref<512x128xf32, #tpu.memory_space<vmem>>, vector<512x128xf32>
    "tpu.trace_start"() <{level = 10 : i32, message = "kh,nh->kn"}> : () -> ()
    %cst = arith.constant dense<0.000000e+00> : vector<8x512xf32>
    %5 = tpu.matmul %3, %4, %cst {dimension_numbers = #tpu.dot_dimension_numbers<[1], [1], [0], [0], [0, 0, 1, 0], [], []>} : vector<8x128xf32>, vector<512x128xf32>, vector<8x512xf32> -> vector<8x512xf32>
    "tpu.trace_stop"() : () -> ()
    %6 = arith.mulf %3, %3 : vector<8x128xf32>
    %cst_4 = arith.constant dense<0.000000e+00> : vector<8xf32>
    %7 = vector.multi_reduction <add>, %6, %cst_4 [1] : vector<8x128xf32> to vector<8xf32>
    %8 = vector.shape_cast %7 : vector<8xf32> to vector<8x1xf32>
    %9 = math.sqrt %8 : vector<8x1xf32>
    %cst_5 = arith.constant 1.000000e+00 : f32
    %10 = vector.broadcast %cst_5 : f32 to vector<1x128xf32>
    %11 = arith.mulf %4, %4 : vector<512x128xf32>
    "tpu.trace_start"() <{level = 10 : i32, message = "oh,nh->on"}> : () -> ()
    %cst_6 = arith.constant dense<0.000000e+00> : vector<1x512xf32>
    %12 = tpu.matmul %10, %11, %cst_6 {dimension_numbers = #tpu.dot_dimension_numbers<[1], [1], [0], [0], [0, 0, 1, 0], [], []>} : vector<1x128xf32>, vector<512x128xf32>, vector<1x512xf32> -> vector<1x512xf32>
    "tpu.trace_stop"() : () -> ()
    %13 = math.sqrt %12 : vector<1x512xf32>
    %14 = vector.broadcast %9 : vector<8x1xf32> to vector<8x512xf32>
    %15 = vector.broadcast %13 : vector<1x512xf32> to vector<8x512xf32>
    %16 = arith.mulf %14, %15 : vector<8x512xf32>
    %cst_7 = arith.constant 1.000000e-07 : f32
    %17 = vector.broadcast %cst_7 : f32 to vector<8x512xf32>
    %18 = arith.addf %16, %17 : vector<8x512xf32>
    %19 = arith.divf %5, %18 : vector<8x512xf32>
    %c0_8 = arith.constant 0 : index
    %c0_9 = arith.constant 0 : index
    %20 = vector.load %arg3[%c0_8, %c0_9] : memref<1x512xi32, #tpu.memory_space<vmem>>, vector<1x512xi32>
    %21 = tpu.iota {dimensions = array<i32: 0>} : vector<8x512xi32>
    %22 = vector.broadcast %20 : vector<1x512xi32> to vector<8x512xi32>
    %23 = arith.cmpi eq, %21, %22 : vector<8x512xi32>
    %c0_i32_10 = arith.constant 0 : i32
    %24 = vector.broadcast %c0_i32_10 : i32 to vector<1x512xi32>
    %25 = arith.cmpi sge, %20, %24 : vector<1x512xi32>
    %cst_11 = arith.constant -7.14285707E-5 : f32
    %cst_12 = arith.constant 0.000000e+00 : f32
    %26 = vector.broadcast %cst_11 : f32 to vector<1x512xf32>
    %27 = vector.broadcast %cst_12 : f32 to vector<1x512xf32>
    %28 = arith.select %25, %26, %27 : vector<1x512xi1>, vector<1x512xf32>
    %cst_13 = arith.constant 1.000000e-03 : f32
    %29 = vector.broadcast %cst_13 : f32 to vector<8x512xf32>
    %30 = vector.shape_cast %28 : vector<1x512xf32> to vector<1x512xf32>
    %31 = vector.broadcast %30 : vector<1x512xf32> to vector<8x512xf32>
    %32 = arith.select %23, %29, %31 : vector<8x512xi1>, vector<8x512xf32>
    %33 = vector.shape_cast %32 : vector<8x512xf32> to vector<1x8x512xf32>
    %cst_14 = arith.constant dense<0.000000e+00> : vector<1xf32>
    %34 = vector.multi_reduction <add>, %33, %cst_14 [1, 2] : vector<1x8x512xf32> to vector<1xf32>
    %35 = vector.shape_cast %34 : vector<1xf32> to vector<1x1x1xf32>
    %36 = vector.extract %35[0, 0, 0] : f32 from vector<1x1x1xf32>
    %37 = vector.broadcast %36 : f32 to vector<1x1xf32>
    %38 = arith.mulf %32, %19 : vector<8x512xf32>
    %39 = vector.shape_cast %38 : vector<8x512xf32> to vector<1x8x512xf32>
    %cst_15 = arith.constant dense<0.000000e+00> : vector<1xf32>
    %40 = vector.multi_reduction <add>, %39, %cst_15 [1, 2] : vector<1x8x512xf32> to vector<1xf32>
    %41 = vector.shape_cast %40 : vector<1xf32> to vector<1x1x1xf32>
    %42 = vector.extract %41[0, 0, 0] : f32 from vector<1x1x1xf32>
    %43 = vector.broadcast %42 : f32 to vector<1x1xf32>
    %44 = arith.subf %37, %43 : vector<1x1xf32>
    %cst_16 = arith.constant 5.000000e-01 : f32
    %45 = vector.broadcast %cst_16 : f32 to vector<1x1xf32>
    %46 = arith.mulf %45, %44 : vector<1x1xf32>
    %c0_17 = arith.constant 0 : index
    %c0_18 = arith.constant 0 : index
    %47 = vector.load %arg4[%c0_17, %c0_18] : memref<1x1xf32, #tpu.memory_space<vmem>>, vector<1x1xf32>
    %48 = arith.addf %47, %46 : vector<1x1xf32>
    %c0_19 = arith.constant 0 : index
    %c0_20 = arith.constant 0 : index
    %49 = vector.load %arg4[%c0_19, %c0_20] : memref<1x1xf32, #tpu.memory_space<vmem>>, vector<1x1xf32>
    tpu.vector_store %arg4[%c0_19, %c0_20], %48 {strides = array<i32>} : memref<1x1xf32, #tpu.memory_space<vmem>>, vector<1x1xf32>,
    return
  }
  func.func @transform_0(%arg0: i32) -> (i32, i32) {
    %c0_i32 = arith.constant 0 : i32
    %c0_i32_0 = arith.constant 0 : i32
    %c0_i32_1 = arith.constant 0 : i32
    return %c0_i32, %c0_i32_0 : i32, i32
  }
  func.func @transform_1(%arg0: i32) -> (i32, i32) {
    %c0_i32 = arith.constant 0 : i32
    %c0_i32_0 = arith.constant 0 : i32
    return %arg0, %c0_i32 : i32, i32
  }
  func.func @transform_2(%arg0: i32) -> (i32, i32) {
    %c0_i32 = arith.constant 0 : i32
    %c0_i32_0 = arith.constant 0 : i32
    return %c0_i32, %arg0 : i32, i32
  }
  func.func @transform_3(%arg0: i32) -> (i32, i32) {
    %c0_i32 = arith.constant 0 : i32
    %c0_i32_0 = arith.constant 0 : i32
    %c0_i32_1 = arith.constant 0 : i32
    return %c0_i32, %c0_i32_0 : i32, i32
  }
}

</mosaic_0001>

<bundles_post_ra>
// kernel: tpu_custom_call.1
= control target key start
LH: loop header
LB: loop body
LE: loop exit
PB: predicated region body
PF: predicated region fallthrough
CT: control target
= control target key end

     0   :  { %8 = vsyncpa [#allocation3], 0  ;;  %s2071_s0 = inlined_call_operand.hbm [shape: f32[8,128], index: 0, kind: input, shape index: {}]   ;;  %s2072_s1 = inlined_call_operand.hbm [shape: f32[1024,128], index: 1, kind: input, shape index: {}]   ;;  %s2073_s2 = inlined_call_operand.hbm [shape: s32[1,1024], index: 2, kind: input, shape index: {}]   ;;  %s2074_s3 = inlined_call_operand.hbm [shape: f32[1,1], index: 3, kind: output, shape index: {}]  }
   0x1   :  { %9 = vsyncpa [#allocation6], 0 }
   0x2   :  { %11 = vsyncpa [#allocation6 + $0x1], 0 }
   0x3   :  { %12 = vsyncpa [#allocation4], 0  ;;  %s1456_s12 = smov 0   ;;  %s1458_s13 = smov 0  }
   0x4   :  { %s1460_s14 = smov 0   ;;  %s1462_s15 = smov 0  }
   0x5 LB: > { %s1477_s16 = sadd.s32 1, %s1424_s15   ;;  %s46_s17 = sadd.s32 1, %s1420_s14  ;;  %s1424_s15 = sphi %s1462_s15, %s2104_s15   ;;  %s1420_s14 = sphi %s1460_s14, %s2103_s14   ;;  %s1416_s13 = sphi %s1458_s13, %s2102_s13   ;;  %s1412_s12 = sphi %s1456_s12, %s2101_s12  }
   0x6   : > { %s43_s18 = ssub.s32 %s1424_s15, %s1477_s16  ;;  %p53_p0 = scmp.ne.s32.totalorder %s1420_s14, %s1416_s13 }
   0x7   : > { %p44_p1 = scmp.eq.s32.totalorder %s43_s18, 0  ;;  %p54_p2 = scmp.eq.s32.totalorder %s1424_s15, 0 }
   0x8   : > { %p1208_p3 = scmp.lt.s32.totalorder %s1424_s15, 2  ;;  %s141_s20 = sand.u32 1, %s1424_s15  }
   0x9   : > { %s1487_s19 = scalar_select %p44_p1, %s1420_s14, %s46_s17  }
   0xa   : > { %p55_p4 = por %p54_p2, %p53_p0  ;;  %s143_s21 = sand.u32 1, %s1420_s14  }
   0xb   : > { %s1017_s22 = sshll.u32 %s143_s21, 9  ;;  %s1033_s23 = sshll.u32 %s1424_s15, 13 }
   0xc   : > { %s1497_s26 = scalar_lea.hbm %s2072_s1, %s1033_s23  ;;  %s145_s27 = scalar_lea.vmem [#allocation5], %s1017_s22 }
   0xd   : > { %s152_s28 = sshll.u32 %s145_s27, 4  ;;  %p1499_p5 = pnand %p1208_p3, %p55_p4  ;;  %s1503_s28 = int_to_ptr.vmem [resolvable:$true] %s152_s28 }
   0xe   : > { %s1505_s30 = scalar_lea.sflag [#allocation6], %s141_s20  ;;  %s1276_s4 = scalar_lea.hbm %s1497_s26, 8192 }
   0xf   : > { %p1277_p6 = scmp.ne.s32.totalorder %s1497_s26, %s1276_s4  ;;  %p2075_p7 = pneg %p1499_p5 }
  0x10   : > { %s1281_s7 = scalar_lea.hbm %s2072_s1, 16384  ;;  %p1282_p10 = scmp.lt.s32.totalorder %s1497_s26, %s2072_s1 }
  0x11   : > { %p1279_p8 = pnand %p2075_p7, %p1277_p6  ;;  %p1283_p11 = scmp.lt.s32.totalorder %s1281_s7, %s1276_s4 }
  0x13   : > { %p1280_p9 = pneg %p1279_p8  ;;  %p1284_p12 = por %p1283_p11, %p1282_p10 }
  0x15   : > { %p1285_p13 = pnand %p1284_p12, %p1280_p9 }
  0x17   : > { %1288 = shalt.err (!%p1285_p13)
}
  0x18   : > { %s1289_s10 = scalar_lea.vmem %s1503_s28, 8192  ;;  %s1426_s11 = smov [#allocation5]  }
  0x19   : > { %p1290_p0 = scmp.ne.s32.totalorder %s1503_s28, %s1289_s10  ;;  %s1294_s17 = sshll.u32 %s1426_s11, 4  ;;  %s1295_s17 = int_to_ptr.vmem [resolvable:$false] %s1294_s17 }
  0x1a   : > { %s1296_s18 = scalar_lea.vmem %s1295_s17, 16384  ;;  %p1297_p3 = scmp.lt.s32.totalorder %s1503_s28, %s1295_s17 }
  0x1b   : > { %p1292_p1 = pnand %p1290_p0, %p2075_p7  ;;  %p1298_p4 = scmp.lt.s32.totalorder %s1296_s18, %s1289_s10 }
  0x1d   : > { %p1293_p2 = pneg %p1292_p1  ;;  %p1299_p6 = por %p1298_p4, %p1297_p3 }
  0x1f   : > { %p1300_p8 = pnand %p1299_p6, %p1293_p2 }
  0x21   : > { %1303 = shalt.err (!%p1300_p8)
}
  0x22   : > { %s1427_s20 = smov 128   ;;  %s1428_s22 = smov 8  }
  0x23   : > { %1203 = dma.hbm_to_vmem [thread:$0]  (!%p1499_p5), %s1497_s26, 8192, %s1503_s28, %s1505_s30, %s1427_s20, %s1427_s20, %s1428_s22  }
  0x24   : > { %s1533_s23 = sadd.s32 4294967295, %s1424_s15   ;;  %p59_p10 = scmp.ne.s32.totalorder %s1416_s13, %s1412_s12 }
  0x25   : > { %p2076_p9 = scmp.eq.s32.totalorder %s1533_s23, 0  ;;  %p1014_p11 = scmp.ge.s32.totalorder %s1424_s15, 1 }
  0x26   : > { %p117_p12 = scmp.lt.s32.totalorder %s1424_s15, 3  ;;  %s1429_s26 = smov [#allocation2]  }
  0x27   : > { %p1543_p0 = por %p2076_p9, %p59_p10  ;;  %s130_s27 = sshll.u32 %s1429_s26, 4  ;;  %s131_s27 = int_to_ptr.vmem [resolvable:$true] %s130_s27 }
  0x28   : > { %p1547_p1 = pnand %p1014_p11, %p117_p12  ;;  %s1020_s28 = sshll.u32 %s143_s21, 2 }
  0x29   : > { %s2084_s24 = scalar_select %p1543_p0, 1, 0 }
  0x2a   : > { %p1196_p2 = pneg %p1547_p1  ;;  %s1034_s12 = sshll.u32 %s1424_s15, 6 }
  0x2b   : > { %s166_s4 = scalar_lea.vmem [#allocation7], %s1020_s28  ;;  %s1561_s8 = scalar_lea.hbm %s2073_s2, %s1034_s12 }
  0x2c   : > { %s174_s5 = sshll.u32 %s166_s4, 4  ;;  %p1197_p3 = pnand %p1196_p2, %p2076_p9  ;;  %s1563_s5 = int_to_ptr.vmem [resolvable:$true] %s174_s5 }
  0x2d   : > { %s1315_s9 = scalar_lea.vmem %s131_s27, 128  ;;  %p1323_p11 = scmp.lt.s32.totalorder %s131_s27, %s131_s27 }
  0x2e   : > { %p1306_p4 = pneg %p1197_p3  ;;  %p1316_p6 = scmp.ne.s32.totalorder %s131_s27, %s1315_s9 }
  0x2f   : > { %p1324_p12 = scmp.lt.s32.totalorder %s1315_s9, %s1315_s9 }
  0x30   : > { %p1318_p8 = pnand %p1316_p6, %p1306_p4 }
  0x31   : > { %p1325_p13 = por %p1324_p12, %p1323_p11 }
  0x32   : > { %p1319_p10 = pneg %p1318_p8 }
  0x34   : > { %p1326_p7 = pnand %p1325_p13, %p1319_p10 }
  0x36   : > { %1329 = shalt.err (!%p1326_p7)
}
  0x37   : > { %1199 = dma.hbm_to_vmem [thread:$0]  (!%p1197_p3), %s2071_s0, 128, %s131_s27, [#allocation3]  }
  0x38   : > { %s1330_s10 = scalar_lea.hbm %s1561_s8, 64  ;;  %p2086_p9 = pneg %p1499_p5 }
  0x39   : > { %p1331_p2 = scmp.ne.s32.totalorder %s1561_s8, %s1330_s10  ;;  %s1335_s18 = scalar_lea.hbm %s2073_s2, 128 }
  0x3a   : > { %p1336_p7 = scmp.lt.s32.totalorder %s1561_s8, %s2073_s2  ;;  %p1337_p13 = scmp.lt.s32.totalorder %s1335_s18, %s1330_s10 }
  0x3b   : > { %p1333_p0 = pnand %p1331_p2, %p2086_p9 }
  0x3c   : > { %p1338_p6 = por %p1337_p13, %p1336_p7 }
  0x3d   : > { %p1334_p4 = pneg %p1333_p0 }
  0x3f   : > { %p1339_p8 = pnand %p1338_p6, %p1334_p4 }
  0x41   : > { %1342 = shalt.err (!%p1339_p8)
}
  0x42   : > { %s1343_s26 = scalar_lea.vmem %s1563_s5, 64  ;;  %s1430_s27 = smov [#allocation7]  }
  0x43   : > { %p1344_p3 = scmp.ne.s32.totalorder %s1563_s5, %s1343_s26  ;;  %s1348_s28 = sshll.u32 %s1430_s27, 4  ;;  %s1349_s28 = int_to_ptr.vmem [resolvable:$false] %s1348_s28 }
  0x44   : > { %s1350_s12 = scalar_lea.vmem %s1349_s28, 128  ;;  %p1351_p11 = scmp.lt.s32.totalorder %s1563_s5, %s1349_s28 }
  0x45   : > { %p1346_p0 = pnand %p1344_p3, %p2086_p9  ;;  %p1352_p12 = scmp.lt.s32.totalorder %s1350_s12, %s1343_s26 }
  0x47   : > { %p1347_p10 = pneg %p1346_p0  ;;  %p1353_p2 = por %p1352_p12, %p1351_p11 }
  0x49   : > { %p1354_p7 = pnand %p1353_p2, %p1347_p10 }
  0x4b   : > { %1357 = shalt.err (!%p1354_p7)
}
  0x4c   : > { %1206 = dma.hbm_to_vmem [thread:$0]  (!%p1499_p5), %s1561_s8, 64, %s1563_s5, %s1505_s30  }
  0x4d   : > { %183 = sbr.rel (%p1547_p1) target bundleno = 1267 (0x4f3), region = 32 }
  0x52   : > { %p2087_p4 = scmp.eq.s32.totalorder %s1533_s23, 0 }
  0x54   : > { %1399 = dma.done.wait (%p2087_p4), [#allocation3], 128   ;;  %p2088_p13 = pmov %p2087_p4 }
  0x55   : > { %s189_s4 = sand.u32 1, %s1533_s23   ;;  %s191_s6 = sand.u32 1, %s1416_s13  }
  0x56   : > { %1401 = vsyncadd (%p2088_p13), [#allocation3], 4294967168  ;;  %s1025_s7 = sshll.u32 %s191_s6, 9  ;;  %s190_s29 = scalar_lea.sflag [#allocation6], %s189_s4 }
  0x57   : > { %s1599_s9 = scalar_lea.vmem [#allocation5], %s1025_s7  ;;  %p2089_p6 = scmp.ne.s32.totalorder %s2084_s24, 0 }
  0x59   : > { %1403 = dma.done.wait (%p2089_p6), %s190_s29, 8256  }
  0x5a   : > { %1405 = vsyncadd (%p2089_p6), %s190_s29, 4294959040  ;;  %s1605_s30 = sshll.u32 %s191_s6, 2  ;;  %p2090_p5 = scmp.ne.s32.totalorder %s1533_s23, 0 }
  0x5b   : > { %s202_s25 = scalar_lea.vmem [#allocation7], %s1605_s30 }
  0x5c   : > { %230 = sbr.rel (%p2090_p5) target bundleno = 682 (0x2aa), region = 48 }
  0x61   : > { %v231_v0 = vld [vmem:[#allocation2] sm:$0xff]  ;;  %v1431_v1 = vmov 0.0   ;;  %vm1432_vm0 = vmmov 0   ;;  %v302_v2 = vlaneseq  ;;  %vm308_vm2 = vcmask 64512  }
  0x62   : > { %1173 = vmatprep.subr.mxu0 %v1431_v1  ;;  %1175 = vmatprep.mubr.msk.f32.mxu0 %vm1432_vm0, %v1431_v1  ;;  %vm353_vm8 = vcmask 0  }
  0x63   : > { %1174 = vmatpush3.xpose.msra.mxu0 %v231_v0  ;;  %v303_v3 = vshrl.u32 %v302_v2, 7  ;;  %v305_v4 = vand.u32 127, %v302_v2 }
  0x65   : > { %vm306_vm1 = vcmp.eq.s32.totalorder %v303_v3, %v305_v4  ;;  %vm336_vm7 = vcmp.gt.s32.totalorder %v305_v4, %v303_v3 }
  0x66   : > { %1176 = vmatmul.mubr.f32.vlgmr.msra.gmra.mxu0 %v231_v0  ;;  %v1028_v29 = vsel %vm336_vm7, 1.0, %v1431_v1 }
 0x126   : > { %v298_v5 = vpop.f32.mrf.mxu0 }
 0x127   : > { %v307_v6 = vsel %vm306_vm1, %v298_v5, 0.0 }
 0x128   : > { %v1177_v7 = vpop.f32.mrf.mxu0  ;;  %v309_v8 = vsel %vm308_vm2, %v307_v6, 0.0 }
 0x129   : > { %310 = vadd.xlane.f32.xlu0 %v309_v8  ;;  %v312_v9 = vrot.slane %v309_v8, 4 }
 0x12b   : > { %v313_v10 = vadd.f32 %v312_v9, %v309_v8 }
 0x12d   : > { %v314_v11 = vrot.slane %v313_v10, 2 }
 0x12f   : > { %v315_v12 = vadd.f32 %v314_v11, %v313_v10 }
 0x131   : > { %v316_v13 = vrot.slane %v315_v12, 1 }
 0x133   : > { %v317_v14 = vadd.f32 %v316_v13, %v315_v12 }
 0x135   : > { %1252 = vrsqrt.f32 %v317_v14  ;;  %vm327_vm3 = vcmp.eq.f32.partialorder %v317_v14, inf  ;;  %v330_v22 = vand.u32 2147483648, %v317_v14  ;;  %vm329_vm6 = vcmp.eq.f32.partialorder %v317_v14, 0.0 }
 0x142   : > { %v1253_v16 = vpop.eup %1252 }
 0x143   : > { %v326_v17 = vmul.f32 %v1253_v16, %v317_v14 }
 0x145   : > { %v328_v20 = vsel %vm327_vm3, %v317_v14, %v326_v17 }
 0x146   : > { %v331_v25 = vsel %vm329_vm6, %v330_v22, %v328_v20 }
 0x1b2   : > { %v311_v15 = vpop.xlane.xlu0 %310 }
 0x1b3   : > { %1254 = vrsqrt.f32 %v311_v15  ;;  %vm320_vm4 = vcmp.eq.f32.partialorder %v311_v15, inf  ;;  %v323_v21 = vand.u32 2147483648, %v311_v15  ;;  %vm322_vm5 = vcmp.eq.f32.partialorder %v311_v15, 0.0 }
 0x1c0   : > { %v1255_v18 = vpop.eup %1254 }
 0x1c1   : > { %v319_v19 = vmul.f32 %v1255_v18, %v311_v15 }
 0x1c3   : > { %v321_v23 = vsel %vm320_vm4, %v311_v15, %v319_v19 }
 0x1c4   : > { %v324_v24 = vsel %vm322_vm5, %v323_v21, %v321_v23 }
 0x1c5   : > { %v332_v26 = vmul.f32 %v331_v25, %v324_v24 }
 0x1c7   : > { %v333_v27 = vadd.f32 1e-07, %v332_v26 }
 0x1c9   : > { %1256 = vrcp.f32 %v333_v27 }
 0x1d6   : > { %v1257_v28 = vpop.eup %1256 }
 0x1d7   : > { %v335_v30 = vmul.f32 %v1257_v28, %v298_v5 }
 0x1d9   : > { %v339_v31 = vmul.f32 %v1028_v29, %v335_v30 }
 0x1db   : > { %v340_v32 = vsel %vm308_vm2, %v339_v31, 0.0 }
 0x1dc   : > { %341 = vadd.xlane.f32.xlu0 %v340_v32 }
 0x265   : > { %v342_v33 = vpop.xlane.xlu0 %341 }
 0x266   : > { %v343_v34 = vrot.slane %v342_v33, 4 }
 0x268   : > { %v344_v35 = vadd.f32 %v343_v34, %v342_v33 }
 0x26a   : > { %v345_v36 = vrot.slane %v344_v35, 2 }
 0x26c   : > { %v346_v37 = vadd.f32 %v345_v36, %v344_v35 }
 0x26e   : > { %v347_v38 = vrot.slane %v346_v37, 1 }
 0x270   : > { %v348_v39 = vadd.f32 %v347_v38, %v346_v37 }
 0x272   : > { %1178 = vpush %v348_v39 }
 0x2a3   : > { %s1179_s24 = spop %1178 }
 0x2a4   : > { %v350_v40 = vstv %s1179_s24 }
 0x2a5   : > { %v351_v41 = vsub.f32 28.0, %v350_v40 }
 0x2a7   : > { %v352_v42 = vmul.f32 -0.005357143, %v351_v41 }
 0x2a9   : > { %354 = vst.msk [vmem:[#allocation8] sm:$0x1] %vm353_vm8, %v352_v42 }
 0x2aa PF: > { %v1613_v43 = vld [vmem:[%s1599_s9 + $0xf8] sm:$0xff]  ;;  %v1627_v47 = vld [vmem:[%s1599_s9 + $0xf0] sm:$0xff]  ;;  %v1643_v51 = vld [vmem:[%s1599_s9 + $0xe8] sm:$0xff]  ;;  %s1435_s15 = smov [#allocation8]   ;;  %vm922_vm8 = vcmask 0   ;;  %p1210_p1 = scmp.eq.s32.totalorder %s1533_s23, 1 }
 0x2ab   : > { %v1616_v44 = vld [vmem:[%s1599_s9 + $0x1f8] sm:$0xff]  ;;  %1037 = vmatprep.subr.mxu0 %v1613_v43  ;;  %v1630_v48 = vld [vmem:[%s1599_s9 + $0x1f0] sm:$0xff]  ;;  %v1646_v52 = vld [vmem:[%s1599_s9 + $0x1e8] sm:$0xff]  ;;  %s931_s21 = sshll.u32 %s1435_s15, 4  ;;  %s932_s21 = int_to_ptr.vmem [resolvable:$true] %s931_s21 }
 0x2ac   : > { %v1619_v45 = vld [vmem:[%s1599_s9 + $0x78] sm:$0xff]  ;;  %1071 = vmatprep.subr.mxu1 %v1616_v44  ;;  %v1637_v49 = vld [vmem:[%s1599_s9 + $0x70] sm:$0xff]  ;;  %v1653_v53 = vld [vmem:[%s1599_s9 + $0x68] sm:$0xff]  ;;  %s1358_s10 = scalar_lea.vmem %s932_s21, 16  ;;  %s1364_s11 = scalar_lea.vmem %s932_s21, 32 }
 0x2ad   : > { %v1624_v46 = vld [vmem:[%s1599_s9 + $0x178] sm:$0xff]  ;;  %1038 = vmatpush3.xpose.msra.mxu0 %v1619_v45  ;;  %v1640_v50 = vld [vmem:[%s1599_s9 + $0x170] sm:$0xff]  ;;  %v1656_v54 = vld [vmem:[%s1599_s9 + $0x168] sm:$0xff]  ;;  %p1359_p8 = scmp.ne.s32.totalorder %s932_s21, %s1358_s10  ;;  %p1365_p0 = scmp.lt.s32.totalorder %s932_s21, %s932_s21 }
 0x2ae   : > { %1072 = vmatpush3.xpose.msra.mxu1 %v1624_v46  ;;  %1039 = vmatprep.subr.mxu0 %v1627_v47  ;;  %v1659_v55 = vld [vmem:[%s1599_s9 + $0xe0] sm:$0xff]  ;;  %v1675_v59 = vld [vmem:[%s1599_s9 + $0xd8] sm:$0xff]  ;;  %v1691_v63 = vld [vmem:[%s1599_s9 + $0xd0] sm:$0xff]  ;;  %p1366_p10 = scmp.lt.s32.totalorder %s1364_s11, %s1358_s10 }
 0x2af   : > { %1073 = vmatprep.subr.mxu1 %v1630_v48  ;;  %v1662_v56 = vld [vmem:[%s1599_s9 + $0x1e0] sm:$0xff]  ;;  %v1678_v60 = vld [vmem:[%s1599_s9 + $0x1d8] sm:$0xff]  ;;  %v1694_v0 = vld [vmem:[%s1599_s9 + $0x1d0] sm:$0xff]  ;;  %p1360_p3 = pnand %p1359_p8, %p1210_p1 }
 0x2b0   : > { %v1669_v57 = vld [vmem:[%s1599_s9 + $0x60] sm:$0xff]  ;;  %v1685_v61 = vld [vmem:[%s1599_s9 + $0x58] sm:$0xff]  ;;  %v1701_v1 = vld [vmem:[%s1599_s9 + $0x50] sm:$0xff]  ;;  %p1367_p11 = por %p1366_p10, %p1365_p0 }
 0x2b1   : > { %1040 = vmatpush3.xpose.msra.mxu0 %v1637_v49  ;;  %v1672_v58 = vld [vmem:[%s1599_s9 + $0x160] sm:$0xff]  ;;  %v1688_v62 = vld [vmem:[%s1599_s9 + $0x158] sm:$0xff]  ;;  %v1704_v2 = vld [vmem:[%s1599_s9 + $0x150] sm:$0xff]  ;;  %p1361_p9 = pneg %p1360_p3 }
 0x2b2   : > { %1074 = vmatpush3.xpose.msra.mxu1 %v1640_v50  ;;  %1041 = vmatprep.subr.mxu0 %v1643_v51  ;;  %v1707_v3 = vld [vmem:[%s1599_s9 + $0xc8] sm:$0xff]  ;;  %v1712_v5 = vld [vmem:[#allocation2] sm:$0xff]  ;;  %v1727_v9 = vld [vmem:[%s1599_s9 + $0xc0] sm:$0xff] }
 0x2b3   : > { %1075 = vmatprep.subr.mxu1 %v1646_v52  ;;  %v1710_v4 = vld [vmem:[%s1599_s9 + $0x1c8] sm:$0xff]  ;;  %v562_v6 = vmul.f32 %v1712_v5, %v1712_v5  ;;  %v1730_v10 = vld [vmem:[%s1599_s9 + $0x1c0] sm:$0xff]  ;;  %1069 = vmatprep.mubr.f32.mxu0 %v1712_v5  ;;  %v1745_v13 = vld [vmem:[%s1599_s9 + $0xb8] sm:$0xff]  ;;  %p1368_p12 = pnand %p1367_p11, %p1361_p9 }
 0x2b4   : > { %v1721_v7 = vld [vmem:[%s1599_s9 + $0x48] sm:$0xff]  ;;  %1103 = vmatprep.mubr.f32.mxu1 %v1712_v5  ;;  %v1739_v11 = vld [vmem:[%s1599_s9 + $0x40] sm:$0xff]  ;;  %v1748_v14 = vld [vmem:[%s1599_s9 + $0x1b8] sm:$0xff] }
 0x2b5   : > { %1042 = vmatpush3.xpose.msra.mxu0 %v1653_v53  ;;  %v1724_v8 = vld [vmem:[%s1599_s9 + $0x148] sm:$0xff]  ;;  %563 = vadd.xlane.f32.xlu0 %v562_v6  ;;  %v1742_v12 = vld [vmem:[%s1599_s9 + $0x140] sm:$0xff]  ;;  %v1755_v15 = vld [vmem:[%s1599_s9 + $0x38] sm:$0xff]  ;;  %v603_v6 = vmul.f32 %v1613_v43, %v1613_v43  ;;  %v602_v43 = vmul.f32 %v1627_v47, %v1627_v47  ;;  %v601_v47 = vmul.f32 %v1643_v51, %v1643_v51 }
 0x2b6   : > { %1076 = vmatpush3.xpose.msra.mxu1 %v1656_v54  ;;  %1043 = vmatprep.subr.mxu0 %v1659_v55  ;;  %v1758_v16 = vld [vmem:[%s1599_s9 + $0x138] sm:$0xff]  ;;  %v1761_v17 = vld [vmem:[%s1599_s9 + $0xb0] sm:$0xff]  ;;  %v1777_v21 = vld [vmem:[%s1599_s9 + $0xa8] sm:$0xff]  ;;  %v600_v51 = vmul.f32 %v1659_v55, %v1659_v55  ;;  %v583_v55 = vmul.f32 %v1685_v61, %v1685_v61 }
 0x2b7   : > { %1077 = vmatprep.subr.mxu1 %v1662_v56  ;;  %v1764_v18 = vld [vmem:[%s1599_s9 + $0x1b0] sm:$0xff]  ;;  %v1780_v22 = vld [vmem:[%s1599_s9 + $0x1a8] sm:$0xff]  ;;  %v1793_v25 = vld [vmem:[%s1599_s9 + $0xa0] sm:$0xff] }
 0x2b8   : > { %v1771_v19 = vld [vmem:[%s1599_s9 + $0x30] sm:$0xff]  ;;  %v1787_v23 = vld [vmem:[%s1599_s9 + $0x28] sm:$0xff]  ;;  %v1796_v26 = vld [vmem:[%s1599_s9 + $0x1a0] sm:$0xff] }
 0x2b9   : > { %1044 = vmatpush3.xpose.msra.mxu0 %v1669_v57  ;;  %v1774_v20 = vld [vmem:[%s1599_s9 + $0x130] sm:$0xff]  ;;  %v1790_v24 = vld [vmem:[%s1599_s9 + $0x128] sm:$0xff]  ;;  %v1803_v27 = vld [vmem:[%s1599_s9 + $0x20] sm:$0xff] }
 0x2ba   : > { %1078 = vmatpush3.xpose.msra.mxu1 %v1672_v58  ;;  %1045 = vmatprep.subr.mxu0 %v1675_v59  ;;  %v1806_v28 = vld [vmem:[%s1599_s9 + $0x120] sm:$0xff]  ;;  %v1809_v29 = vld [vmem:[%s1599_s9 + $0x98] sm:$0xff]  ;;  %v1825_v33 = vld [vmem:[%s1599_s9 + $0x90] sm:$0xff] }
 0x2bb   : > { %1079 = vmatprep.subr.mxu1 %v1678_v60  ;;  %v1812_v30 = vld [vmem:[%s1599_s9 + $0x198] sm:$0xff]  ;;  %v1828_v34 = vld [vmem:[%s1599_s9 + $0x190] sm:$0xff]  ;;  %v1841_v37 = vld [vmem:[%s1599_s9 + $0x88] sm:$0xff] }
 0x2bc   : > { %v1819_v31 = vld [vmem:[%s1599_s9 + $0x18] sm:$0xff]  ;;  %v1835_v35 = vld [vmem:[%s1599_s9 + $0x10] sm:$0xff]  ;;  %2093 = vst [vmem:[#allocation14_spill] sm:$0xff] %v1841_v37  ;;  %v1844_v38 = vld [vmem:[%s1599_s9 + $0x188] sm:$0xff] }
 0x2bd   : > { %1046 = vmatpush3.xpose.msra.mxu0 %v1685_v61  ;;  %v1822_v32 = vld [vmem:[%s1599_s9 + $0x118] sm:$0xff]  ;;  %2091 = vst [vmem:[#allocation12_spill] sm:$0xff] %v1835_v35  ;;  %v1838_v36 = vld [vmem:[%s1599_s9 + $0x110] sm:$0xff]  ;;  %2094 = vst [vmem:[#allocation15_spill] sm:$0xff] %v1844_v38  ;;  %v597_v61 = vmul.f32 %v1707_v3, %v1707_v3 }
 0x2be   : > { %1080 = vmatpush3.xpose.msra.mxu1 %v1688_v62  ;;  %1047 = vmatprep.subr.mxu0 %v1691_v63  ;;  %2092 = vst [vmem:[#allocation13_spill] sm:$0xff] %v1838_v36  ;;  %v1851_v39 = vld [vmem:[%s1599_s9 + $0x8] sm:$0xff]  ;;  %v1857_v41 = vld [vmem:[%s1599_s9 + $0x80] sm:$0xff] }
 0x2bf   : > { %1081 = vmatprep.subr.mxu1 %v1694_v0  ;;  %v1854_v40 = vld [vmem:[%s1599_s9 + $0x108] sm:$0xff]  ;;  %v1860_v42 = vld [vmem:[%s1599_s9 + $0x180] sm:$0xff] }
 0x2c0   : > { %2095 = vst [vmem:[#allocation16_spill] sm:$0xff] %v1854_v40 }
 0x2c1   : > { %1048 = vmatpush3.xpose.msra.mxu0 %v1701_v1 }
 0x2c2   : > { %1082 = vmatpush3.xpose.msra.mxu1 %v1704_v2  ;;  %1049 = vmatprep.subr.mxu0 %v1707_v3  ;;  %v580_v3 = vmul.f32 %v1739_v11, %v1739_v11 }
 0x2c3   : > { %1083 = vmatprep.subr.mxu1 %v1710_v4 }
 0x2c5   : > { %1050 = vmatpush3.xpose.msra.mxu0 %v1721_v7 }
 0x2c6   : > { %1084 = vmatpush3.xpose.msra.mxu1 %v1724_v8  ;;  %1051 = vmatprep.subr.mxu0 %v1727_v9 }
 0x2c7   : > { %1085 = vmatprep.subr.mxu1 %v1730_v10 }
 0x2c9   : > { %1052 = vmatpush3.xpose.msra.mxu0 %v1739_v11  ;;  %v594_v11 = vmul.f32 %v1761_v17, %v1761_v17 }
 0x2ca   : > { %1086 = vmatpush3.xpose.msra.mxu1 %v1742_v12  ;;  %1053 = vmatprep.subr.mxu0 %v1745_v13 }
 0x2cb   : > { %1087 = vmatprep.subr.mxu1 %v1748_v14 }
 0x2cd   : > { %1054 = vmatpush3.xpose.msra.mxu0 %v1755_v15 }
 0x2ce   : > { %1088 = vmatpush3.xpose.msra.mxu1 %v1758_v16  ;;  %1055 = vmatprep.subr.mxu0 %v1761_v17  ;;  %v577_v17 = vmul.f32 %v1787_v23, %v1787_v23 }
 0x2cf   : > { %1089 = vmatprep.subr.mxu1 %v1764_v18 }
 0x2d1   : > { %1056 = vmatpush3.xpose.msra.mxu0 %v1771_v19 }
 0x2d2   : > { %1090 = vmatpush3.xpose.msra.mxu1 %v1774_v20  ;;  %1057 = vmatprep.subr.mxu0 %v1777_v21 }
 0x2d3   : > { %1091 = vmatprep.subr.mxu1 %v1780_v22 }
 0x2d5   : > { %1058 = vmatpush3.xpose.msra.mxu0 %v1787_v23  ;;  %v591_v23 = vmul.f32 %v1809_v29, %v1809_v29 }
 0x2d6   : > { %1092 = vmatpush3.xpose.msra.mxu1 %v1790_v24  ;;  %1059 = vmatprep.subr.mxu0 %v1793_v25 }
 0x2d7   : > { %1093 = vmatprep.subr.mxu1 %v1796_v26 }
 0x2d9   : > { %1060 = vmatpush3.xpose.msra.mxu0 %v1803_v27 }
 0x2da   : > { %1094 = vmatpush3.xpose.msra.mxu1 %v1806_v28  ;;  %1061 = vmatprep.subr.mxu0 %v1809_v29  ;;  %v2096_v29 = vld [vmem:[#allocation12_spill] sm:$0xff] }
 0x2db   : > { %1095 = vmatprep.subr.mxu1 %v1812_v30 }
 0x2dd   : > { %1062 = vmatpush3.xpose.msra.mxu0 %v1819_v31 }
 0x2de   : > { %1096 = vmatpush3.xpose.msra.mxu1 %v1822_v32  ;;  %1063 = vmatprep.subr.mxu0 %v1825_v33 }
 0x2df   : > { %1097 = vmatprep.subr.mxu1 %v1828_v34 }
 0x2e1   : > { %1064 = vmatpush3.xpose.msra.mxu0 %v1835_v35  ;;  %v587_v35 = vmul.f32 %v1619_v45, %v1619_v45  ;;  %v586_v45 = vmul.f32 %v1637_v49, %v1637_v49  ;;  %v585_v49 = vmul.f32 %v1653_v53, %v1653_v53  ;;  %v599_v53 = vmul.f32 %v1675_v59, %v1675_v59 }
 0x2e2   : > { %1098 = vmatpush3.xpose.msra.mxu1 %v1838_v36  ;;  %1065 = vmatprep.subr.mxu0 %v1841_v37  ;;  %v635_v37 = vmul.f32 %v1616_v44, %v1616_v44  ;;  %v1874_v36 = vld [vmem:[%s1599_s9 + $0x100] sm:$0xff]  ;;  %v634_v44 = vmul.f32 %v1630_v48, %v1630_v48  ;;  %v633_v48 = vmul.f32 %v1646_v52, %v1646_v52 }
 0x2e3   : > { %1099 = vmatprep.subr.mxu1 %v1844_v38  ;;  %v1871_v38 = vld [vmem:[%s1599_s9] sm:$0xff]  ;;  %v632_v52 = vmul.f32 %v1662_v56, %v1662_v56  ;;  %v615_v56 = vmul.f32 %v1688_v62, %v1688_v62  ;;  %v582_v59 = vmul.f32 %v1701_v1, %v1701_v1  ;;  %v629_v62 = vmul.f32 %v1710_v4, %v1710_v4 }
 0x2e4   : > { %v596_v1 = vmul.f32 %v1727_v9, %v1727_v9  ;;  %v612_v4 = vmul.f32 %v1742_v12, %v1742_v12  ;;  %v579_v9 = vmul.f32 %v1755_v15, %v1755_v15  ;;  %v626_v12 = vmul.f32 %v1764_v18, %v1764_v18 }
 0x2e5   : > { %1066 = vmatpush3.xpose.msra.mxu0 %v1851_v39  ;;  %v593_v15 = vmul.f32 %v1777_v21, %v1777_v21  ;;  %v609_v18 = vmul.f32 %v1790_v24, %v1790_v24  ;;  %v576_v21 = vmul.f32 %v1803_v27, %v1803_v27  ;;  %v623_v24 = vmul.f32 %v1812_v30, %v1812_v30 }
 0x2e6   : > { %1100 = vmatpush3.xpose.msra.mxu1 %v1854_v40  ;;  %1067 = vmatprep.subr.mxu0 %v1857_v41  ;;  %v619_v40 = vmul.f32 %v1624_v46, %v1624_v46  ;;  %v618_v46 = vmul.f32 %v1640_v50, %v1640_v50  ;;  %v617_v50 = vmul.f32 %v1656_v54, %v1656_v54 }
 0x2e7   : > { %1101 = vmatprep.subr.mxu1 %v1860_v42  ;;  %v631_v54 = vmul.f32 %v1678_v60, %v1678_v60  ;;  %v614_v60 = vmul.f32 %v1704_v2, %v1704_v2  ;;  %v628_v2 = vmul.f32 %v1730_v10, %v1730_v10  ;;  %v611_v10 = vmul.f32 %v1758_v16, %v1758_v16 }
 0x2e8   : > { %v625_v16 = vmul.f32 %v1780_v22, %v1780_v22  ;;  %v608_v22 = vmul.f32 %v1806_v28, %v1806_v28  ;;  %v590_v27 = vmul.f32 %v1825_v33, %v1825_v33  ;;  %v622_v28 = vmul.f32 %v1828_v34, %v1828_v34  ;;  %v2100_v34 = vld [vmem:[#allocation16_spill] sm:$0xff] }
 0x2e9   : > { %1068 = vmatpush3.xpose.msra.mxu0 %v1871_v38  ;;  %v574_v30 = vmul.f32 %v2096_v29, %v2096_v29  ;;  %v573_v33 = vmul.f32 %v1851_v39, %v1851_v39  ;;  %v604_v39 = vmul.f32 %v1874_v36, %v1874_v36 }
 0x2ea   : > { %1102 = vmatpush3.xpose.msra.mxu1 %v1874_v36  ;;  %1105 = vmatprep.subr.mxu0 %v603_v6 }
 0x2eb   : > { %1139 = vmatprep.subr.mxu1 %v635_v37  ;;  %v1433_v37 = vmov 1.0  }
 0x2ec   : > { %1070 = vmatmul.mubr.f32.vlgmr.msra.gmra.mxu0 %v1712_v5 }
 0x2ed   : > { %1104 = vmatmul.mubr.f32.vlgmr.msra.gmra.mxu1 %v1712_v5  ;;  %1106 = vmatpush3.xpose.msra.mxu0 %v587_v35  ;;  %v584_v5 = vmul.f32 %v1669_v57, %v1669_v57  ;;  %v616_v35 = vmul.f32 %v1672_v58, %v1672_v58  ;;  %v598_v57 = vmul.f32 %v1691_v63, %v1691_v63 }
 0x2ee   : > { %1140 = vmatpush3.xpose.msra.mxu1 %v619_v40  ;;  %1107 = vmatprep.subr.mxu0 %v602_v43  ;;  %v630_v58 = vmul.f32 %v1694_v0, %v1694_v0  ;;  %v581_v63 = vmul.f32 %v1721_v7, %v1721_v7  ;;  %v613_v0 = vmul.f32 %v1724_v8, %v1724_v8  ;;  %v2097_v40 = vld [vmem:[#allocation13_spill] sm:$0xff]  ;;  %v2099_v43 = vld [vmem:[#allocation15_spill] sm:$0xff] }
 0x2ef   : > { %1141 = vmatprep.subr.mxu1 %v634_v44  ;;  %1137 = vmatprep.mubr.f32.mxu0 %v1433_v37  ;;  %v595_v7 = vmul.f32 %v1745_v13, %v1745_v13  ;;  %v627_v8 = vmul.f32 %v1748_v14, %v1748_v14  ;;  %v578_v13 = vmul.f32 %v1771_v19, %v1771_v19 }
 0x2f0   : > { %1171 = vmatprep.mubr.f32.mxu1 %v1433_v37  ;;  %v610_v14 = vmul.f32 %v1774_v20, %v1774_v20  ;;  %v592_v19 = vmul.f32 %v1793_v25, %v1793_v25  ;;  %v624_v20 = vmul.f32 %v1796_v26, %v1796_v26  ;;  %v575_v25 = vmul.f32 %v1819_v31, %v1819_v31  ;;  %v2098_v31 = vld [vmem:[#allocation14_spill] sm:$0xff] }
 0x2f1   : > { %1108 = vmatpush3.xpose.msra.mxu0 %v586_v45  ;;  %v607_v26 = vmul.f32 %v1822_v32, %v1822_v32  ;;  %v606_v6 = vmul.f32 %v2097_v40, %v2097_v40  ;;  %v589_v32 = vmul.f32 %v2098_v31, %v2098_v31  ;;  %v621_v44 = vmul.f32 %v2099_v43, %v2099_v43 }
 0x2f2   : > { %1142 = vmatpush3.xpose.msra.mxu1 %v618_v46  ;;  %1109 = vmatprep.subr.mxu0 %v601_v47  ;;  %v605_v45 = vmul.f32 %v2100_v34, %v2100_v34  ;;  %v588_v46 = vmul.f32 %v1857_v41, %v1857_v41  ;;  %v620_v47 = vmul.f32 %v1860_v42, %v1860_v42  ;;  %v806_v41 = vlaneseq }
 0x2f3   : > { %1143 = vmatprep.subr.mxu1 %v633_v48  ;;  %v572_v48 = vmul.f32 %v1871_v38, %v1871_v38 }
 0x2f4   : > { %v807_v42 = vshrl.u32 %v806_v41, 7 }
 0x2f5   : > { %1110 = vmatpush3.xpose.msra.mxu0 %v585_v49 }
 0x2f6   : > { %1144 = vmatpush3.xpose.msra.mxu1 %v617_v50  ;;  %1111 = vmatprep.subr.mxu0 %v600_v51  ;;  %v2008_v49 = vsub.s32 0, %v807_v42  ;;  %v838_v50 = vld [vmem:[%s202_s25] sm:$0xf]  ;;  %v847_v38 = vsub.s32 1, %v807_v42  ;;  %v851_v51 = vsub.s32 2, %v807_v42 }
 0x2f7   : > { %1145 = vmatprep.subr.mxu1 %v632_v52  ;;  %v855_v52 = vsub.s32 3, %v807_v42  ;;  %vm861_vm9 = vcmp.ge.s32.totalorder %v838_v50, 0 }
 0x2f8   : > { %v844_v36 = vrot.slane %v838_v50, %v2008_v49 }
 0x2f9   : > { %1112 = vmatpush3.xpose.msra.mxu0 %v584_v5  ;;  %v848_v5 = vrot.slane %v838_v50, %v847_v38 }
 0x2fa   : > { %1146 = vmatpush3.xpose.msra.mxu1 %v616_v35  ;;  %1113 = vmatprep.subr.mxu0 %v599_v53  ;;  %v852_v35 = vrot.slane %v838_v50, %v851_v51  ;;  %v856_v53 = vrot.slane %v838_v50, %v855_v52  ;;  %vm857_vm10 = vcmp.eq.s32.totalorder %v807_v42, %v844_v36 }
 0x2fb   : > { %1147 = vmatprep.subr.mxu1 %v631_v54  ;;  %v1434_v54 = vmov 0.0   ;;  %vm858_vm11 = vcmp.eq.s32.totalorder %v807_v42, %v848_v5 }
 0x2fc   : > { %vm859_vm12 = vcmp.eq.s32.totalorder %v807_v42, %v852_v35  ;;  %vm860_vm13 = vcmp.eq.s32.totalorder %v807_v42, %v856_v53 }
 0x2fd   : > { %1114 = vmatpush3.xpose.msra.mxu0 %v583_v55  ;;  %v862_v55 = vsel %vm861_vm9, -7.142857e-05, %v1434_v54 }
 0x2fe   : > { %1148 = vmatpush3.xpose.msra.mxu1 %v615_v56  ;;  %1115 = vmatprep.subr.mxu0 %v598_v57  ;;  %v871_v56 = vrot.slane %v862_v55, %v847_v38  ;;  %v875_v57 = vrot.slane %v862_v55, %v851_v51 }
 0x2ff   : > { %1149 = vmatprep.subr.mxu1 %v630_v58  ;;  %v879_v58 = vrot.slane %v862_v55, %v855_v52 }
 0x301   : > { %1116 = vmatpush3.xpose.msra.mxu0 %v582_v59 }
 0x302   : > { %1150 = vmatpush3.xpose.msra.mxu1 %v614_v60  ;;  %1117 = vmatprep.subr.mxu0 %v597_v61  ;;  %v2016_v60 = vsel %vm858_vm11, 0.001, %v871_v56  ;;  %v2018_v61 = vsel %vm859_vm12, 0.001, %v875_v57 }
 0x303   : > { %1151 = vmatprep.subr.mxu1 %v629_v62 }
 0x305   : > { %1118 = vmatpush3.xpose.msra.mxu0 %v581_v63  ;;  %v2022_v63 = vsel %vm860_vm13, 0.001, %v879_v58 }
 0x306   : > { %1152 = vmatpush3.xpose.msra.mxu1 %v613_v0  ;;  %1119 = vmatprep.subr.mxu0 %v596_v1 }
 0x307   : > { %1153 = vmatprep.subr.mxu1 %v628_v2 }
 0x309   : > { %1120 = vmatpush3.xpose.msra.mxu0 %v580_v3 }
 0x30a   : > { %1154 = vmatpush3.xpose.msra.mxu1 %v612_v4  ;;  %1121 = vmatprep.subr.mxu0 %v595_v7 }
 0x30b   : > { %1155 = vmatprep.subr.mxu1 %v627_v8 }
 0x30d   : > { %1122 = vmatpush3.xpose.msra.mxu0 %v579_v9 }
 0x30e   : > { %1156 = vmatpush3.xpose.msra.mxu1 %v611_v10  ;;  %1123 = vmatprep.subr.mxu0 %v594_v11 }
 0x30f   : > { %1157 = vmatprep.subr.mxu1 %v626_v12 }
 0x311   : > { %1124 = vmatpush3.xpose.msra.mxu0 %v578_v13 }
 0x312   : > { %1158 = vmatpush3.xpose.msra.mxu1 %v610_v14  ;;  %1125 = vmatprep.subr.mxu0 %v593_v15 }
 0x313   : > { %1159 = vmatprep.subr.mxu1 %v625_v16 }
 0x315   : > { %1126 = vmatpush3.xpose.msra.mxu0 %v577_v17 }
 0x316   : > { %1160 = vmatpush3.xpose.msra.mxu1 %v609_v18  ;;  %1127 = vmatprep.subr.mxu0 %v592_v19 }
 0x317   : > { %1161 = vmatprep.subr.mxu1 %v624_v20 }
 0x319   : > { %1128 = vmatpush3.xpose.msra.mxu0 %v576_v21 }
 0x31a   : > { %1162 = vmatpush3.xpose.msra.mxu1 %v608_v22  ;;  %1129 = vmatprep.subr.mxu0 %v591_v23 }
 0x31b   : > { %1163 = vmatprep.subr.mxu1 %v623_v24 }
 0x31d   : > { %1130 = vmatpush3.xpose.msra.mxu0 %v575_v25 }
 0x31e   : > { %1164 = vmatpush3.xpose.msra.mxu1 %v607_v26  ;;  %1131 = vmatprep.subr.mxu0 %v590_v27 }
 0x31f   : > { %1165 = vmatprep.subr.mxu1 %v622_v28 }
 0x321   : > { %1132 = vmatpush3.xpose.msra.mxu0 %v574_v30 }
 0x322   : > { %1166 = vmatpush3.xpose.msra.mxu1 %v606_v6  ;;  %1133 = vmatprep.subr.mxu0 %v589_v32 }
 0x323   : > { %1167 = vmatprep.subr.mxu1 %v621_v44 }
 0x325   : > { %1134 = vmatpush3.xpose.msra.mxu0 %v573_v33 }
 0x326   : > { %1168 = vmatpush3.xpose.msra.mxu1 %v605_v45  ;;  %1135 = vmatprep.subr.mxu0 %v588_v46 }
 0x327   : > { %1169 = vmatprep.subr.mxu1 %v620_v47 }
 0x329   : > { %1136 = vmatpush3.xpose.msra.mxu0 %v572_v48 }
 0x32a   : > { %1170 = vmatpush3.xpose.msra.mxu1 %v604_v39 }
 0x32c   : > { %1138 = vmatmul.mubr.f32.vlgmr.msra.gmra.mxu0 %v1433_v37 }
 0x32d   : > { %1172 = vmatmul.mubr.f32.vlgmr.msra.gmra.mxu1 %v1433_v37  ;;  %v867_v37 = vrot.slane %v862_v55, %v2008_v49 }
 0x32f   : > { %v2014_v59 = vsel %vm857_vm10, 0.001, %v867_v37 }
 0x330   : > { %v888_v62 = vadd.f32 %v2016_v60, %v2014_v59 }
 0x332   : > { %v889_v0 = vadd.f32 %v888_v62, %v2018_v61 }
 0x334   : > { %v890_v1 = vadd.f32 %v889_v0, %v2022_v63 }
 0x336   : > { %891 = vadd.xlane.f32.xlu0 %v890_v1 }
 0x33e   : > { %v564_v2 = vpop.xlane.xlu0 %563 }
 0x33f   : > { %1258 = vrsqrt.f32 %v564_v2  ;;  %vm567_vm14 = vcmp.eq.f32.partialorder %v564_v2, inf  ;;  %v570_v15 = vand.u32 2147483648, %v564_v2  ;;  %vm569_vm15 = vcmp.eq.f32.partialorder %v564_v2, 0.0 }
 0x34c   : > { %v1259_v13 = vpop.eup %1258 }
 0x34d   : > { %v566_v14 = vmul.f32 %v1259_v13, %v564_v2 }
 0x34f   : > { %v568_v16 = vsel %vm567_vm14, %v564_v2, %v566_v14 }
 0x350   : > { %v571_v18 = vsel %vm569_vm15, %v570_v15, %v568_v16 }
 0x3ac   : > { %v2026_v3 = vpop.f32.mrf.mxu0 }
 0x3ad   : > { %v2028_v4 = vpop.f32.mrf.mxu1 }
 0x3ae   : > { %v2030_v7 = vpop.f32.mrf.mxu0 }
 0x3af   : > { %v2032_v8 = vpop.f32.mrf.mxu1 }
 0x3ec   : > { %v702_v9 = vpop.f32.mrf.mxu0 }
 0x3ed   : > { %v773_v10 = vpop.f32.mrf.mxu1  ;;  %1260 = vrsqrt.f32 %v702_v9  ;;  %vm780_vm0 = vcmp.eq.f32.partialorder %v702_v9, inf  ;;  %vm782_vm1 = vcmp.eq.f32.partialorder %v702_v9, 0.0  ;;  %v783_v21 = vand.u32 2147483648, %v702_v9 }
 0x3ee   : > { %1262 = vrsqrt.f32 %v773_v10  ;;  %v704_v11 = vpop.f32.mrf.mxu0  ;;  %vm794_vm2 = vcmp.eq.f32.partialorder %v773_v10, inf  ;;  %vm796_vm3 = vcmp.eq.f32.partialorder %v773_v10, 0.0  ;;  %v797_v24 = vand.u32 2147483648, %v773_v10 }
 0x3ef   : > { %v775_v12 = vpop.f32.mrf.mxu1  ;;  %1264 = vrsqrt.f32 %v704_v11  ;;  %vm787_vm4 = vcmp.eq.f32.partialorder %v704_v11, inf  ;;  %vm789_vm5 = vcmp.eq.f32.partialorder %v704_v11, 0.0  ;;  %v790_v28 = vand.u32 2147483648, %v704_v11 }
 0x3f0   : > { %1266 = vrsqrt.f32 %v775_v12  ;;  %vm801_vm6 = vcmp.eq.f32.partialorder %v775_v12, inf  ;;  %v804_v43 = vand.u32 2147483648, %v775_v12  ;;  %vm803_vm7 = vcmp.eq.f32.partialorder %v775_v12, 0.0 }
 0x3fa   : > { %v1261_v17 = vpop.eup %1260 }
 0x3fb   : > { %v1263_v19 = vpop.eup %1262  ;;  %v779_v20 = vmul.f32 %v1261_v17, %v702_v9 }
 0x3fc   : > { %v1265_v22 = vpop.eup %1264  ;;  %v793_v23 = vmul.f32 %v1263_v19, %v773_v10 }
 0x3fd   : > { %v1267_v25 = vpop.eup %1266  ;;  %v781_v26 = vsel %vm780_vm0, %v702_v9, %v779_v20  ;;  %v786_v27 = vmul.f32 %v1265_v22, %v704_v11 }
 0x3fe   : > { %v784_v29 = vsel %vm782_vm1, %v783_v21, %v781_v26  ;;  %v795_v30 = vsel %vm794_vm2, %v773_v10, %v793_v23  ;;  %v800_v40 = vmul.f32 %v1267_v25, %v775_v12 }
 0x3ff   : > { %v809_v6 = vrot.slane %v784_v29, %v2008_v49  ;;  %v798_v31 = vsel %vm796_vm3, %v797_v24, %v795_v30  ;;  %v788_v32 = vsel %vm787_vm4, %v704_v11, %v786_v27 }
 0x400   : > { %v817_v44 = vrot.slane %v798_v31, %v2008_v49  ;;  %v791_v33 = vsel %vm789_vm5, %v790_v28, %v788_v32  ;;  %v802_v34 = vsel %vm801_vm6, %v775_v12, %v800_v40 }
 0x401   : > { %v822_v45 = vmul.f32 %v809_v6, %v571_v18  ;;  %v813_v46 = vrot.slane %v791_v33, %v2008_v49  ;;  %v805_v47 = vsel %vm803_vm7, %v804_v43, %v802_v34 }
 0x402   : > { %v824_v48 = vmul.f32 %v817_v44, %v571_v18  ;;  %v821_v39 = vrot.slane %v805_v47, %v2008_v49 }
 0x403   : > { %v826_v41 = vadd.f32 1e-07, %v822_v45  ;;  %v823_v42 = vmul.f32 %v813_v46, %v571_v18 }
 0x404   : > { %v828_v50 = vadd.f32 1e-07, %v824_v48  ;;  %v825_v38 = vmul.f32 %v821_v39, %v571_v18  ;;  %v920_v18 = vld [vmem:[#allocation8] sm:$0x1] }
 0x405   : > { %1268 = vrcp.f32 %v826_v41  ;;  %v827_v51 = vadd.f32 1e-07, %v823_v42 }
 0x406   : > { %1270 = vrcp.f32 %v828_v50  ;;  %v829_v52 = vadd.f32 1e-07, %v825_v38 }
 0x407   : > { %1272 = vrcp.f32 %v827_v51 }
 0x408   : > { %1274 = vrcp.f32 %v829_v52 }
 0x412   : > { %v1269_v36 = vpop.eup %1268 }
 0x413   : > { %v1271_v5 = vpop.eup %1270  ;;  %v831_v35 = vmul.f32 %v1269_v36, %v2026_v3  ;;  %v892_v3 = vpop.xlane.xlu0 %891 }
 0x414   : > { %v1273_v53 = vpop.eup %1272  ;;  %v835_v49 = vmul.f32 %v1271_v5, %v2028_v4  ;;  %v893_v9 = vrot.slane %v892_v3, 4 }
 0x415   : > { %v1275_v54 = vpop.eup %1274  ;;  %v833_v55 = vmul.f32 %v1273_v53, %v2030_v7  ;;  %v901_v56 = vmul.f32 %v2014_v59, %v831_v35 }
 0x416   : > { %v837_v37 = vmul.f32 %v1275_v54, %v2032_v8  ;;  %v903_v58 = vmul.f32 %v2018_v61, %v835_v49  ;;  %v894_v10 = vadd.f32 %v893_v9, %v892_v3 }
 0x417   : > { %v902_v57 = vmul.f32 %v2016_v60, %v833_v55 }
 0x418   : > { %v904_v0 = vmul.f32 %v2022_v63, %v837_v37  ;;  %v895_v7 = vrot.slane %v894_v10, 2 }
 0x419   : > { %v905_v62 = vadd.f32 %v902_v57, %v901_v56 }
 0x41a   : > { %v896_v11 = vadd.f32 %v895_v7, %v894_v10 }
 0x41b   : > { %v906_v1 = vadd.f32 %v905_v62, %v903_v58 }
 0x41c   : > { %v897_v4 = vrot.slane %v896_v11, 1 }
 0x41d   : > { %v907_v2 = vadd.f32 %v906_v1, %v904_v0 }
 0x41e   : > { %v898_v12 = vadd.f32 %v897_v4, %v896_v11 }
 0x41f   : > { %908 = vadd.xlane.f32.xlu1 %v907_v2 }
 0x420   : > { %1180 = vpush %v898_v12 }
 0x451   : > { %s1181_s5 = spop %1180 }
 0x452   : > { %v900_v63 = vstv %s1181_s5 }
 0x4a8   : > { %v909_v8 = vpop.xlane.xlu1 %908 }
 0x4a9   : > { %v910_v59 = vrot.slane %v909_v8, 4 }
 0x4ab   : > { %v911_v13 = vadd.f32 %v910_v59, %v909_v8 }
 0x4ad   : > { %v912_v60 = vrot.slane %v911_v13, 2 }
 0x4af   : > { %v913_v61 = vadd.f32 %v912_v60, %v911_v13 }
 0x4b1   : > { %v914_v14 = vrot.slane %v913_v61, 1 }
 0x4b3   : > { %v915_v15 = vadd.f32 %v914_v14, %v913_v61 }
 0x4b5   : > { %1182 = vpush %v915_v15 }
 0x4e6   : > { %s1183_s8 = spop %1182 }
 0x4e7   : > { %v917_v16 = vstv %s1183_s8 }
 0x4e8   : > { %v918_v17 = vsub.f32 %v900_v63, %v917_v16 }
 0x4ea   : > { %v919_v19 = vmul.f32 0.5, %v918_v17 }
 0x4ec   : > { %v921_v20 = vadd.f32 %v920_v18, %v919_v19 }
 0x4ee   : > { %923 = vst.msk [vmem:[#allocation8] sm:$0x1] %vm922_vm8, %v921_v20 }
 0x4ef   : > { %1371 = shalt.err (!%p1368_p12)
}
 0x4f0   : > { %1193 = dma.vmem_to_hbm [thread:$0]  (%p1210_p1), %s932_s21, 16, %s2074_s3, [#allocation4]  }
 0x4f1   : > { %1407 = dma.done.wait (%p1210_p1), [#allocation4], 16  }
 0x4f2   : > { %1409 = vsyncadd (%p1210_p1), [#allocation4], 4294967280 }
 0x4f3 PF: > { %p15_p2 = scmp.ge.s32.totalorder %s1477_s16, 4   ;;  %s2101_s12 = smov %s1416_s13 }
 0x4f4   : > { %s2102_s13 = smov %s1420_s14  ;;  %s2103_s14 = smov %s1487_s19 }
 0x4f5   : > { %s2104_s15 = smov %s1477_s16  ;;  %17 = sbr.rel (!%p15_p2) target bundleno = 5 (0x5), region = 89 }
 0x4fa   :  { %944 = vsyncpa [#allocation3], 1 }
 0x4fb   :  { %946 = vsyncpa [#allocation3 + $0x1], 1 }
 0x4fc   :  { %947 = vsyncpa [#allocation6], 1 }
 0x4fd   :  { %949 = vsyncpa [#allocation6 + $0x1], 1 }
 0x4fe   :  { %950 = vsyncpa [#allocation4], 1 }
 0x4ff   :  { %952 = vsyncpa [#allocation4 + $0x1], 1 }

</bundles_post_ra>
